<compile_context>
chip_gen: v5e
topology: v5e:2x2
jax: 0.10.0
libtpu: 0.0.40
codegen_flags: <defaults>
</compile_context>

<pallas_src>
import functools

import jax
import jax.numpy as jnp
from jax.experimental import pallas as pl
from jax.experimental.pallas import tpu as pltpu


def _round_up(x: int, m: int) -> int:
    return (x + m - 1) // m * m


def _embed_kernel(ids_ref, wte_hbm, out_ref, row_buf, sem, *, scale, tile_t, nsem):
    # ids_ref: SMEM (n_pad,) int32 token ids (scalar-prefetched, whole array)
    # wte_hbm: HBM-resident (vocab_size, n_embd) table (memory_space=pl.ANY)
    # out_ref: VMEM (tile_t, n_embd) output tile
    # row_buf: VMEM (tile_t, n_embd) scratch holding the gathered rows
    # sem:     DMA semaphores, shape (nsem,) -> nsem row-DMAs in flight
    base = pl.program_id(0) * tile_t

    def start_row(t):
        tok = ids_ref[base + t]
        pltpu.make_async_copy(wte_hbm.at[tok], row_buf.at[t], sem.at[t % nsem]).start()

    # Prime the in-flight window.
    @pl.loop(0, nsem)
    def _(t):
        start_row(t)

    # Steady state: wait for row t, immediately launch row t + nsem.
    @pl.loop(0, tile_t)
    def _(t):
        # Wait only needs the copy's size (one row) and its semaphore slot.
        pltpu.make_async_copy(wte_hbm.at[0], row_buf.at[0], sem.at[t % nsem]).wait()

        @pl.when(t + nsem < tile_t)
        def _():
            start_row(t + nsem)

    rows = row_buf[...]
    if scale is not None:                     # trace-time branch: no mul when unscaled
        rows = rows.astype(jnp.float32) * scale
    out_ref[...] = rows.astype(out_ref.dtype)


def gpt_embedding(idx, wte, *, scale_embeddings=False, tile_t=128, max_inflight=8):
    """Pallas equivalent of GPTEmbedding.forward.

    idx: (B, T) integer token ids
    wte: (vocab_size, n_embd) embedding table (stays in HBM; rows are DMA-gathered)
    returns: (B, T, n_embd) in wte.dtype
    """
    B, T = idx.shape
    vocab_size, n_embd = wte.shape
    N = B * T

    # Tile of tokens per grid step: multiple of 8 (sublane), no bigger than needed.
    tile_t = max(8, min(tile_t, _round_up(N, 8)))
    tile_t = _round_up(tile_t, 8)
    n_pad = _round_up(N, tile_t)
    num_tiles = n_pad // tile_t
    nsem = max(1, min(max_inflight, tile_t))   # in-flight row DMAs per tile

    idx_flat = idx.reshape(N).astype(jnp.int32)
    if n_pad != N:
        idx_flat = jnp.concatenate(
            [idx_flat, jnp.zeros((n_pad - N,), jnp.int32)])   # pad with valid id 0

    # Static Python float -> literal at trace time (no captured jax constant).
    scale = float(n_embd) ** 0.5 if scale_embeddings else None

    kernel = functools.partial(_embed_kernel, scale=scale, tile_t=tile_t, nsem=nsem)

    grid_spec = pltpu.PrefetchScalarGridSpec(
        num_scalar_prefetch=1,                 # idx_flat -> SMEM
        grid=(num_tiles,),
        in_specs=[
            # Embedding table stays in HBM; gathered row-by-row with manual DMA.
            pl.BlockSpec(memory_space=pl.ANY),
        ],
        out_specs=pl.BlockSpec((tile_t, n_embd), lambda i, ids: (i, 0)),
        scratch_shapes=[
            pltpu.VMEM((tile_t, n_embd), wte.dtype),
            pltpu.SemaphoreType.DMA((nsem,)),
        ],
    )

    out_flat = pl.pallas_call(
        kernel,
        out_shape=jax.ShapeDtypeStruct((n_pad, n_embd), wte.dtype),
        grid_spec=grid_spec,
        compiler_params=pltpu.CompilerParams(
            dimension_semantics=("parallel",),   # independent token tiles
        ),
    )(idx_flat, wte)

    return out_flat[:N].reshape(B, T, n_embd)


if __name__ == "__main__":
    # Deterministic synthetic parameters / inputs (no checkpoint loading).
    vocab_size = 256
    n_embd = 128
    B, T = 2, 8

    key = jax.random.PRNGKey(0)
    k_w, k_idx = jax.random.split(key)
    wte = jax.random.normal(k_w, (vocab_size, n_embd), dtype=jnp.float32)
    idx = jax.random.randint(k_idx, (B, T), 0, vocab_size, dtype=jnp.int32)

    # Scaled path.
    out = jax.block_until_ready(gpt_embedding(idx, wte, scale_embeddings=True))
    ref = jnp.take(wte, idx, axis=0) * (float(n_embd) ** 0.5)
    assert out.shape == (B, T, n_embd)
    assert out.dtype == wte.dtype
    assert jnp.allclose(out, ref, atol=1e-5, rtol=1e-5)

    # Unscaled path (plain gather, no multiply emitted).
    out2 = jax.block_until_ready(gpt_embedding(idx, wte, scale_embeddings=False))
    ref2 = jnp.take(wte, idx, axis=0)
    assert jnp.allclose(out2, ref2, atol=1e-5, rtol=1e-5)

    print("KERNEL_OK")
</pallas_src>

<mosaic_0001>
module attributes {stable_mosaic.version = 11 : i64} {
  func.func @_embed_kernel(%arg0: i32, %arg1: memref<16xi32, #tpu.memory_space<smem>>, %arg2: memref<256x128xf32, #tpu.memory_space<any>>, %arg3: memref<16x128xf32, #tpu.memory_space<vmem>>, %arg4: memref<16x128xf32, #tpu.memory_space<vmem>>, %arg5: memref<8x!tpu.dma_semaphore, #tpu.memory_space<semaphore_mem>>) attributes {dimension_semantics = [#tpu.dimension_semantics<parallel>], iteration_bounds = array<i64: 1>, scalar_prefetch = 1 : i64, scratch_operands = 2 : i64, tpu.core_type = #tpu.core_type<tc>, window_params = [{}, {transform_indices = @transform_1, window_bounds = array<i64: 16, 128>}]} {
    %c16_i32 = arith.constant 16 : i32
    %0 = arith.muli %arg0, %c16_i32 : i32
    %c0_i32 = arith.constant 0 : i32
    %c8_i32 = arith.constant 8 : i32
    %1 = arith.addi %c0_i32, %c8_i32 : i32
    %c1_i32 = arith.constant 1 : i32
    scf.for %arg6 = %c0_i32 to %1 step %c1_i32  : i32 {
      %c1_i32_8 = arith.constant 1 : i32
      %7 = arith.muli %arg6, %c1_i32_8 : i32
      %c0_i32_9 = arith.constant 0 : i32
      %8 = arith.addi %c0_i32_9, %7 : i32
      %9 = arith.addi %0, %8 : i32
      %10 = arith.index_cast %9 : i32 to index
      %11 = memref.load %arg1[%10] : memref<16xi32, #tpu.memory_space<smem>>
      %c8_i32_10 = arith.constant 8 : i32
      %c0_i32_11 = arith.constant 0 : i32
      %12 = arith.cmpi eq, %c8_i32_10, %c0_i32_11 : i32
      %c1_i32_12 = arith.constant 1 : i32
      %13 = arith.select %12, %c1_i32_12, %c8_i32_10 : i32
      %14 = arith.remsi %8, %13 : i32
      %c0_i32_13 = arith.constant 0 : i32
      %15 = arith.cmpi ne, %14, %c0_i32_13 : i32
      %c0_i32_14 = arith.constant 0 : i32
      %16 = arith.cmpi slt, %14, %c0_i32_14 : i32
      %c0_i32_15 = arith.constant 0 : i32
      %17 = arith.cmpi slt, %13, %c0_i32_15 : i32
      %18 = arith.xori %16, %17 : i1
      %19 = arith.andi %18, %15 : i1
      %20 = arith.addi %14, %13 : i32
      %21 = arith.select %19, %20, %14 : i32
      %c0_i32_16 = arith.constant 0 : i32
      %22 = tpu.memref_slice %arg2[%11, %c0_i32_16] : memref<256x128xf32, #tpu.memory_space<any>> -> memref<1x128xf32, #tpu.memory_space<any>>
      %23 = tpu.memref_squeeze %22 : memref<1x128xf32, #tpu.memory_space<any>> -> memref<128xf32, #tpu.memory_space<any>>
      %c0_i32_17 = arith.constant 0 : i32
      %24 = tpu.memref_slice %arg4[%8, %c0_i32_17] : memref<16x128xf32, #tpu.memory_space<vmem>> -> memref<1x128xf32, #tpu.memory_space<vmem>>
      %25 = tpu.memref_squeeze %24 : memref<1x128xf32, #tpu.memory_space<vmem>> -> memref<128xf32, #tpu.memory_space<vmem>>
      %26 = tpu.memref_slice %arg5[%21] : memref<8x!tpu.dma_semaphore, #tpu.memory_space<semaphore_mem>> -> memref<1x!tpu.dma_semaphore, #tpu.memory_space<semaphore_mem>>
      %27 = tpu.memref_squeeze %26 : memref<1x!tpu.dma_semaphore, #tpu.memory_space<semaphore_mem>> -> memref<!tpu.dma_semaphore, #tpu.memory_space<semaphore_mem>>
      tpu.enqueue_dma source(%23 : memref<128xf32, #tpu.memory_space<any>>) target(%25 : memref<128xf32, #tpu.memory_space<vmem>>) target_semaphore(%27 : memref<!tpu.dma_semaphore, #tpu.memory_space<semaphore_mem>>)
    }
    %c8_i32_0 = arith.constant 8 : i32
    %c0_i32_1 = arith.constant 0 : i32
    %c16_i32_2 = arith.constant 16 : i32
    %2 = arith.addi %c0_i32_1, %c16_i32_2 : i32
    %c1_i32_3 = arith.constant 1 : i32
    scf.for %arg6 = %c0_i32_1 to %2 step %c1_i32_3  : i32 {
      %c1_i32_8 = arith.constant 1 : i32
      %7 = arith.muli %arg6, %c1_i32_8 : i32
      %c0_i32_9 = arith.constant 0 : i32
      %8 = arith.addi %c0_i32_9, %7 : i32
      %c8_i32_10 = arith.constant 8 : i32
      %c0_i32_11 = arith.constant 0 : i32
      %9 = arith.cmpi eq, %c8_i32_10, %c0_i32_11 : i32
      %c1_i32_12 = arith.constant 1 : i32
      %10 = arith.select %9, %c1_i32_12, %c8_i32_10 : i32
      %11 = arith.remsi %8, %10 : i32
      %c0_i32_13 = arith.constant 0 : i32
      %12 = arith.cmpi ne, %11, %c0_i32_13 : i32
      %c0_i32_14 = arith.constant 0 : i32
      %13 = arith.cmpi slt, %11, %c0_i32_14 : i32
      %c0_i32_15 = arith.constant 0 : i32
      %14 = arith.cmpi slt, %10, %c0_i32_15 : i32
      %15 = arith.xori %13, %14 : i1
      %16 = arith.andi %15, %12 : i1
      %17 = arith.addi %11, %10 : i32
      %18 = arith.select %16, %17, %11 : i32
      %c0_i32_16 = arith.constant 0 : i32
      %c0_i32_17 = arith.constant 0 : i32
      %c0_i32_18 = arith.constant 0 : i32
      %19 = tpu.memref_slice %arg2[%c0_i32_16, %c0_i32_18] : memref<256x128xf32, #tpu.memory_space<any>> -> memref<1x128xf32, #tpu.memory_space<any>>
      %20 = tpu.memref_squeeze %19 : memref<1x128xf32, #tpu.memory_space<any>> -> memref<128xf32, #tpu.memory_space<any>>
      %c0_i32_19 = arith.constant 0 : i32
      %21 = tpu.memref_slice %arg4[%c0_i32_17, %c0_i32_19] : memref<16x128xf32, #tpu.memory_space<vmem>> -> memref<1x128xf32, #tpu.memory_space<vmem>>
      %22 = tpu.memref_squeeze %21 : memref<1x128xf32, #tpu.memory_space<vmem>> -> memref<128xf32, #tpu.memory_space<vmem>>
      %23 = tpu.memref_slice %arg5[%18] : memref<8x!tpu.dma_semaphore, #tpu.memory_space<semaphore_mem>> -> memref<1x!tpu.dma_semaphore, #tpu.memory_space<semaphore_mem>>
      %24 = tpu.memref_squeeze %23 : memref<1x!tpu.dma_semaphore, #tpu.memory_space<semaphore_mem>> -> memref<!tpu.dma_semaphore, #tpu.memory_space<semaphore_mem>>
      tpu.wait_dma2 semaphore(%24 : memref<!tpu.dma_semaphore, #tpu.memory_space<semaphore_mem>>) src(%20 : memref<128xf32, #tpu.memory_space<any>>) dst(%22 : memref<128xf32, #tpu.memory_space<vmem>>)
      %c8_i32_20 = arith.constant 8 : i32
      %25 = arith.addi %8, %c8_i32_20 : i32
      %c16_i32_21 = arith.constant 16 : i32
      %26 = arith.cmpi slt, %25, %c16_i32_21 : i32
      %27 = arith.extui %26 : i1 to i32
      %c0_i32_22 = arith.constant 0 : i32
      %28 = arith.cmpi ne, %27, %c0_i32_22 : i32
      scf.if %28 {
        %c8_i32_23 = arith.constant 8 : i32
        %29 = arith.addi %8, %c8_i32_23 : i32
        %30 = arith.addi %0, %29 : i32
        %31 = arith.index_cast %30 : i32 to index
        %32 = memref.load %arg1[%31] : memref<16xi32, #tpu.memory_space<smem>>
        %c8_i32_24 = arith.constant 8 : i32
        %c0_i32_25 = arith.constant 0 : i32
        %33 = arith.cmpi eq, %c8_i32_24, %c0_i32_25 : i32
        %c1_i32_26 = arith.constant 1 : i32
        %34 = arith.select %33, %c1_i32_26, %c8_i32_24 : i32
        %35 = arith.remsi %29, %34 : i32
        %c0_i32_27 = arith.constant 0 : i32
        %36 = arith.cmpi ne, %35, %c0_i32_27 : i32
        %c0_i32_28 = arith.constant 0 : i32
        %37 = arith.cmpi slt, %35, %c0_i32_28 : i32
        %c0_i32_29 = arith.constant 0 : i32
        %38 = arith.cmpi slt, %34, %c0_i32_29 : i32
        %39 = arith.xori %37, %38 : i1
        %40 = arith.andi %39, %36 : i1
        %41 = arith.addi %35, %34 : i32
        %42 = arith.select %40, %41, %35 : i32
        %c0_i32_30 = arith.constant 0 : i32
        %43 = tpu.memref_slice %arg2[%32, %c0_i32_30] : memref<256x128xf32, #tpu.memory_space<any>> -> memref<1x128xf32, #tpu.memory_space<any>>
        %44 = tpu.memref_squeeze %43 : memref<1x128xf32, #tpu.memory_space<any>> -> memref<128xf32, #tpu.memory_space<any>>
        %c0_i32_31 = arith.constant 0 : i32
        %45 = tpu.memref_slice %arg4[%29, %c0_i32_31] : memref<16x128xf32, #tpu.memory_space<vmem>> -> memref<1x128xf32, #tpu.memory_space<vmem>>
        %46 = tpu.memref_squeeze %45 : memref<1x128xf32, #tpu.memory_space<vmem>> -> memref<128xf32, #tpu.memory_space<vmem>>
        %47 = tpu.memref_slice %arg5[%42] : memref<8x!tpu.dma_semaphore, #tpu.memory_space<semaphore_mem>> -> memref<1x!tpu.dma_semaphore, #tpu.memory_space<semaphore_mem>>
        %48 = tpu.memref_squeeze %47 : memref<1x!tpu.dma_semaphore, #tpu.memory_space<semaphore_mem>> -> memref<!tpu.dma_semaphore, #tpu.memory_space<semaphore_mem>>
        tpu.enqueue_dma source(%44 : memref<128xf32, #tpu.memory_space<any>>) target(%46 : memref<128xf32, #tpu.memory_space<vmem>>) target_semaphore(%48 : memref<!tpu.dma_semaphore, #tpu.memory_space<semaphore_mem>>)
      } else {
      }
    }
    %c16_i32_4 = arith.constant 16 : i32
    %c0 = arith.constant 0 : index
    %c0_5 = arith.constant 0 : index
    %3 = vector.load %arg4[%c0, %c0_5] : memref<16x128xf32, #tpu.memory_space<vmem>>, vector<16x128xf32>
    %cst = arith.constant 11.3137083 : f32
    %4 = vector.broadcast %cst : f32 to vector<16x128xf32>
    %5 = arith.mulf %3, %4 : vector<16x128xf32>
    %c0_6 = arith.constant 0 : index
    %c0_7 = arith.constant 0 : index
    %6 = vector.load %arg3[%c0_6, %c0_7] : memref<16x128xf32, #tpu.memory_space<vmem>>, vector<16x128xf32>
    tpu.vector_store %arg3[%c0_6, %c0_7], %5 {strides = array<i32>} : memref<16x128xf32, #tpu.memory_space<vmem>>, vector<16x128xf32>,
    return
  }
  func.func @transform_1(%arg0: i32, %arg1: memref<16xi32, #tpu.memory_space<smem>>) -> (i32, i32) {
    %c0_i32 = arith.constant 0 : i32
    %c0_i32_0 = arith.constant 0 : i32
    return %arg0, %c0_i32 : i32, i32
  }
}

</mosaic_0001>

<bundles_post_ra>
// kernel: tpu_custom_call.1
= control target key start
LH: loop header
LB: loop body
LE: loop exit
PB: predicated region body
PF: predicated region fallthrough
CT: control target
= control target key end

     0   :  { %s359_s12 = smov [#allocation5]   ;;  %s461_s0 = inlined_call_operand.hbm [shape: s32[16], index: 0, kind: input, shape index: {}]   ;;  %s462_s1 = inlined_call_operand.hbm [shape: f32[256,128], index: 1, kind: input, shape index: {}]   ;;  %s463_s2 = inlined_call_operand.hbm [shape: f32[16,128], index: 2, kind: output, shape index: {}]  }
   0x1   :  { %s8_s11 = sshll.u32 %s461_s0, 4  ;;  %s9_s11 = int_to_ptr.hbm [resolvable:$true] %s8_s11 }
   0x2   :  { %11 = dma.hbm_to_smem %s9_s11, 16, %s359_s12, [#allocation4] }
   0x3   :  { %345 = dma.done.wait [#allocation4], 16 }
   0x4   :  { %346 = vsyncadd [#allocation4], 4294967280 }
   0x5   :  { %14 = sfence }
   0x6   :  { %15 = vsyncpa [#allocation7], 0  ;;  %s382_s13 = smov 0  }
   0x7 LB: > { %s24_s0 = sld [smem:[#allocation5 + %s353_s13]]  ;;  %p25_p0 = scmp.lt.s32.totalorder %s353_s13, 0  ;;  %s353_s13 = sphi %s382_s13, %s22_s13  }
   0x8   : > { %s26_s14 = ssub.s32 0, %s353_s13  ;;  %s38_s18 = scalar_lea.vmem [#allocation2], %s353_s13 }
   0x9   : > { %s206_s15 = smin.u32 %s353_s13, %s26_s14  ;;  %s392_s19 = sshll.u32 %s38_s18, 4  ;;  %s50_s19 = int_to_ptr.vmem [resolvable:$true] %s392_s19 }
   0xa   : > { %s28_s16 = sand.u32 7, %s206_s15   ;;  %s265_s30 = scalar_lea.hbm %s462_s1, 256 }
   0xb   : > { %s29_s17 = ssub.s32 0, %s28_s16 }
   0xc   : > { %s465_s17 = smov (!%p25_p0, %s29_s17), %s28_s16 }
   0xd   : > { %s37_s22 = scalar_lea.hbm %s462_s1, %s24_s0  ;;  %p208_p1 = scmp.lt.s32.totalorder %s465_s17, 0 }
   0xe   : > { %s35_s23 = sadd.s32 8, %s465_s17  ;;  %s47_s24 = sshll.u32 %s37_s22, 4  ;;  %s48_s24 = int_to_ptr.hbm [resolvable:$true] %s47_s24 }
   0xf   : > { %s467_s23 = smov (!%p208_p1, %s35_s23), %s465_s17  ;;  %s261_s26 = sshra.s32 %s48_s24, 4  ;;  %s262_s26 = int_to_ptr.hbm [resolvable:$true] %s261_s26 }
  0x10   : > { %s39_s25 = scalar_lea.sflag [#allocation3], %s467_s23  ;;  %s263_s27 = scalar_lea.hbm %s262_s26, 1 }
  0x11   : > { %p264_p2 = scmp.ne.s32.totalorder %s262_s26, %s263_s27  ;;  %p266_p3 = scmp.lt.s32.totalorder %s262_s26, %s462_s1 }
  0x12   : > { %p267_p4 = scmp.lt.s32.totalorder %s265_s30, %s263_s27 }
  0x14   : > { %p268_p5 = por %p267_p4, %p266_p3 }
  0x16   : > { %p269_p6 = pnand %p268_p5, %p264_p2 }
  0x18   : > { %272 = shalt.err (!%p269_p6)  }
  0x19   : > { %s273_s7 = sshra.s32 %s50_s19, 4  ;;  %s360_s9 = smov [#allocation2]   ;;  %s274_s7 = int_to_ptr.vmem [resolvable:$true] %s273_s7 }
  0x1a   : > { %s275_s8 = scalar_lea.vmem %s274_s7, 1  ;;  %s408_s10 = scalar_lea.vmem %s360_s9, 16 }
  0x1b   : > { %p276_p7 = scmp.ne.s32.totalorder %s274_s7, %s275_s8  ;;  %p278_p8 = scmp.lt.s32.totalorder %s274_s7, [#allocation2] }
  0x1c   : > { %p279_p9 = scmp.lt.s32.totalorder %s408_s10, %s275_s8 }
  0x1e   : > { %p280_p10 = por %p279_p9, %p278_p8 }
  0x20   : > { %p281_p11 = pnand %p280_p10, %p276_p7 }
  0x22   : > { %284 = shalt.err (!%p281_p11)  }
  0x23   : > { %52 = dma.hbm_to_vmem [thread:$0]  %s48_s24, 16, %s50_s19, %s39_s25 }
  0x24   : > { %s22_s13 = sadd.s32 1, %s353_s13  }
  0x25   : > { %p19_p12 = scmp.ge.s32.totalorder %s22_s13, 8  }
  0x26   :  { %s414_s11 = smov (%p19_p12), 0  }
  0x27   :  { %21 = sbr.rel (!%p19_p12) target bundleno = 7 (0x7), region = 60 }
  0x2c LB: > { %p59_p13 = scmp.lt.s32.totalorder %s357_s11, 0  ;;  %s60_s12 = ssub.s32 0, %s357_s11  ;;  %s357_s11 = sphi %s414_s11, %s58_s11  }
  0x2d   : > { %s209_s0 = smin.u32 %s357_s11, %s60_s12 }
  0x2e   : > { %s62_s14 = sand.u32 7, %s209_s0  }
  0x2f   : > { %s63_s15 = ssub.s32 0, %s62_s14 }
  0x30   : > { %s469_s15 = smov (!%p59_p13, %s63_s15), %s62_s14 }
  0x31   : > { %p211_p0 = scmp.lt.s32.totalorder %s469_s15, 0  ;;  %s69_s16 = sadd.s32 8, %s469_s15 }
  0x33   : > { %s471_s16 = smov (!%p211_p0, %s69_s16), %s469_s15 }
  0x34   : > { %s71_s13 = scalar_lea.sflag [#allocation3], %s471_s16 }
  0x35   : > { %347 = dma.done.wait %s71_s13, 16 }
  0x36   : > { %348 = vsyncadd %s71_s13, 4294967280  ;;  %s423_s17 = sadd.s32 8, %s357_s11  ;;  %s193_s25 = scalar_lea.vmem [#allocation2], %s357_s11 }
  0x37   : > { %p228_p1 = scmp.lt.s32.totalorder %s423_s17, 16  ;;  %p81_p2 = scmp.lt.s32.totalorder %s423_s17, 0 }
  0x38   : > { %s82_s18 = ssub.s32 0, %s423_s17  ;;  %s194_s26 = scalar_lea.vmem %s193_s25, 8 [#allocation2] }
  0x39   : > { %s225_s19 = scalar_select %p228_p1, [#allocation5], [#allocation14] }
  0x3a   : > { %s226_s20 = scalar_select %p228_p1, %s423_s17, 0 }
  0x3b   : > { %s213_s21 = smin.u32 %s82_s18, %s423_s17  ;;  %s105_s27 = sshll.u32 %s194_s26, 4  ;;  %s106_s27 = int_to_ptr.vmem [resolvable:$true] %s105_s27 }
  0x3c   : > { %s80_s22 = sld [smem:[%s225_s19 + %s226_s20]]  ;;  %s84_s23 = sand.u32 7, %s213_s21  }
  0x3d   : > { %s85_s24 = ssub.s32 0, %s84_s23 }
  0x3e   : > { %s473_s24 = smov (!%p81_p2, %s85_s24), %s84_s23 }
  0x3f   : > { %p215_p3 = scmp.lt.s32.totalorder %s473_s24, 0  ;;  %s91_s4 = sadd.s32 8, %s473_s24 }
  0x41   : > { %s475_s4 = smov (!%p215_p3, %s91_s4), %s473_s24 }
  0x42   : > { %s93_s3 = scalar_lea.hbm %s462_s1, %s80_s22  ;;  %s95_s6 = scalar_lea.sflag [#allocation3], %s475_s4 }
  0x43   : > { %s438_s5 = sshll.u32 %s93_s3, 4  ;;  %s104_s5 = int_to_ptr.hbm [resolvable:$true] %s438_s5 }
  0x44   : > { %s285_s7 = sshra.s32 %s104_s5, 4  ;;  %s286_s7 = int_to_ptr.hbm [resolvable:$true] %s285_s7 }
  0x45   : > { %s287_s8 = scalar_lea.hbm %s286_s7, 1  ;;  %p292_p7 = scmp.lt.s32.totalorder %s286_s7, %s462_s1 }
  0x46   : > { %p288_p4 = scmp.ne.s32.totalorder %s286_s7, %s287_s8  ;;  %p293_p8 = scmp.lt.s32.totalorder %s265_s30, %s287_s8 }
  0x48   : > { %p289_p5 = pnand %p288_p4, %p228_p1  ;;  %p294_p9 = por %p293_p8, %p292_p7 }
  0x4a   : > { %p290_p6 = pneg %p289_p5 }
  0x4c   : > { %p295_p10 = pnand %p294_p9, %p290_p6 }
  0x4e   : > { %298 = shalt.err (!%p295_p10)  }
  0x4f   : > { %s299_s15 = sshra.s32 %s106_s27, 4  ;;  %s300_s15 = int_to_ptr.vmem [resolvable:$true] %s299_s15 }
  0x50   : > { %s301_s16 = scalar_lea.vmem %s300_s15, 1  ;;  %p306_p0 = scmp.lt.s32.totalorder %s300_s15, [#allocation2] }
  0x51   : > { %p302_p11 = scmp.ne.s32.totalorder %s300_s15, %s301_s16  ;;  %p307_p2 = scmp.lt.s32.totalorder %s408_s10, %s301_s16 }
  0x53   : > { %p303_p12 = pnand %p302_p11, %p228_p1  ;;  %p308_p3 = por %p307_p2, %p306_p0 }
  0x55   : > { %p304_p13 = pneg %p303_p12 }
  0x57   : > { %p309_p4 = pnand %p308_p3, %p304_p13 }
  0x59   : > { %312 = shalt.err (!%p309_p4)  }
  0x5a   : > { %227 = dma.hbm_to_vmem [thread:$0]  (%p228_p1), %s104_s5, 16, %s106_s27, %s95_s6 }
  0x5b   : > { %s58_s11 = sadd.s32 1, %s357_s11  }
  0x5c   : > { %p55_p5 = scmp.ge.s32.totalorder %s58_s11, 16  }
  0x5d   :  { %v109_v0 = vld [vmem:[#allocation2] sm:$0xff] (%p55_p5)  ;;  %v110_v1 = vld [vmem:[#allocation2 + $0x8] sm:$0xff] (%p55_p5)  ;;  %s121_s19 = sshll.u32 (%p55_p5), %s463_s2, 4  ;;  %s361_s20 = smov (%p55_p5), [#allocation6]   ;;  %s122_s19 = int_to_ptr.hbm [resolvable:$true] %s121_s19 }
  0x5e   :  { %57 = sbr.rel (!%p55_p5) target bundleno = 44 (0x2c), region = 71  ;;  %v111_v2 = vmul.f32 (%p55_p5), 11.313708, %v109_v0  ;;  %v112_v3 = vmul.f32 (%p55_p5), 11.313708, %v110_v1  ;;  %s119_s21 = sshll.u32 (%p55_p5), %s361_s20, 4  ;;  %s120_s21 = int_to_ptr.vmem [resolvable:$true] %s119_s21 }
  0x5f   :  { %s362_s17 = smov (%p55_p5), 128   ;;  %s363_s22 = smov (%p55_p5), 8  }
  0x60   :  { %113 = vst [vmem:[#allocation6] sm:$0xff] (%p55_p5), %v111_v2 }
  0x61   :  { %114 = vst [vmem:[#allocation6 + $0x8] sm:$0xff] (%p55_p5), %v112_v3 }
  0x62   :  { %127 = dma.vmem_to_hbm [thread:$0]  (%p55_p5), %s120_s21, 256, %s122_s19, [#allocation7], %s362_s17, %s362_s17, %s363_s22  }
  0x63   :  { %349 = dma.done.wait [#allocation7], 256  }
  0x64   :  { %350 = vsyncadd [#allocation7], 4294967040 }
  0x65   :  { %132 = vsyncpa [#allocation7], 1 }
  0x66   :  { %133 = vsyncmov [#allocation3] }
  0x69   :  { %s134_s1 = vpop.sfrf %133 }
  0x6a   :  { %p216_p1 = scmp.ne.s32.totalorder %s134_s1, 0 }
  0x6c   :  { %138 = shalt.err (%p216_p1)  }
  0x6d   :  { %140 = vsyncmov [#allocation3 + $0x1] }
  0x70   :  { %s141_s2 = vpop.sfrf %140 }
  0x71   :  { %p217_p6 = scmp.ne.s32.totalorder %s141_s2, 0 }
  0x73   :  { %145 = shalt.err (%p217_p6)  }
  0x74   :  { %147 = vsyncmov [#allocation3 + $0x2] }
  0x77   :  { %s148_s30 = vpop.sfrf %147 }
  0x78   :  { %p218_p7 = scmp.ne.s32.totalorder %s148_s30, 0 }
  0x7a   :  { %152 = shalt.err (%p218_p7)  }
  0x7b   :  { %154 = vsyncmov [#allocation3 + $0x3] }
  0x7e   :  { %s155_s10 = vpop.sfrf %154 }
  0x7f   :  { %p219_p8 = scmp.ne.s32.totalorder %s155_s10, 0 }
  0x81   :  { %159 = shalt.err (%p219_p8)  }
  0x82   :  { %161 = vsyncmov [#allocation3 + $0x4] }
  0x85   :  { %s162_s11 = vpop.sfrf %161 }
  0x86   :  { %p220_p9 = scmp.ne.s32.totalorder %s162_s11, 0 }
  0x88   :  { %166 = shalt.err (%p220_p9)  }
  0x89   :  { %168 = vsyncmov [#allocation3 + $0x5] }
  0x8c   :  { %s169_s23 = vpop.sfrf %168 }
  0x8d   :  { %p221_p10 = scmp.ne.s32.totalorder %s169_s23, 0 }
  0x8f   :  { %173 = shalt.err (%p221_p10)  }
  0x90   :  { %175 = vsyncmov [#allocation3 + $0x6] }
  0x93   :  { %s176_s24 = vpop.sfrf %175 }
  0x94   :  { %p222_p11 = scmp.ne.s32.totalorder %s176_s24, 0 }
  0x96   :  { %180 = shalt.err (%p222_p11)  }
  0x97   :  { %182 = vsyncmov [#allocation3 + $0x7] }
  0x9a   :  { %s183_s25 = vpop.sfrf %182 }
  0x9b   :  { %p223_p12 = scmp.ne.s32.totalorder %s183_s25, 0 }
  0x9d   :  { %187 = shalt.err (%p223_p12)  }

</bundles_post_ra>
